<compile_context>
chip_gen: v6e
topology: v6e:2x2x1
jax: 0.10.0
libtpu: 0.0.40
codegen_flags: <defaults>
</compile_context>

<pallas_src>
import functools

import numpy as np
import jax
import jax.numpy as jnp
from jax.experimental import pallas as pl
from jax.experimental.pallas import tpu as pltpu

d_k = d_v = 9
d_model = 27
n_heads = 3
LN_EPS = 1e-5  # torch.nn.LayerNorm default
# Note: the PyTorch module builds nn.LayerNorm(d_model) inside forward(), so its
# affine params are always fresh-initialized (gamma=1, beta=0); hard-coding that
# here is exact, not an approximation.


def mha_kernel(batch, seq, x_ref, wqkv_ref, wfc_ref, out_ref, attn_ref):
    """x_ref:    [3, B*L, d_model]   row-stacked (q, k, v) inputs
       wqkv_ref: [d_model, 3*n_heads*d_k]  (Wq*scale | Wk | Wv), pre-transposed
       wfc_ref:  [n_heads*d_v, d_model]    pre-transposed output projection
       out_ref:  [B*L, d_model]
       attn_ref: [B*L, n_heads*L]          lane-dense attention slab"""
    n = batch * seq
    hk = n_heads * d_k

    x3 = x_ref[...]                       # [3, n, d_model]
    residual = x3[0]                      # q-input rows, used as residual

    # One fused projection for Q, K and V (single MXU push, single weight DMA).
    # Cross products (e.g. xk @ Wq lanes) are computed but discarded; MXU
    # lanes/sublanes are idle anyway so they are free.
    x2 = x3.reshape(3 * n, d_model)
    proj = jnp.dot(x2, wqkv_ref[...], preferred_element_type=jnp.float32)  # [3n, 3*hk]
    q = proj[0 * n:1 * n, 0 * hk:1 * hk]   # [n, hk]  (scale already folded in)
    k = proj[1 * n:2 * n, 1 * hk:2 * hk]
    v = proj[2 * n:3 * n, 2 * hk:3 * hk]

    ctx_rows = []
    attn_rows = []
    for b in range(batch):                 # static unroll: B is tiny here
        r0 = b * seq
        qb = q[r0:r0 + seq, :]
        kb = k[r0:r0 + seq, :]
        vb = v[r0:r0 + seq, :]
        ctx_h = []
        attn_h = []
        for h in range(n_heads):           # static unroll (n_heads = 3)
            c0 = h * d_k
            qh = qb[:, c0:c0 + d_k]
            kh = kb[:, c0:c0 + d_k]
            vh = vb[:, c0:c0 + d_v]

            # scores = Q_h K_h^T (contract shared d_k axis; no materialized K^T)
            scores = jax.lax.dot_general(
                qh, kh, (((1,), (1,)), ((), ())),
                preferred_element_type=jnp.float32)            # [seq, seq]

            # exact softmax (EUP exp; exact division keeps returned attn exact)
            m = jnp.max(scores, axis=-1, keepdims=True)
            e = jnp.exp(scores - m)
            attn = e / jnp.sum(e, axis=-1, keepdims=True)       # [seq, seq]

            attn_h.append(attn)
            ctx_h.append(jnp.dot(attn, vh,
                                 preferred_element_type=jnp.float32))  # [seq, d_v]

        attn_rows.append(jnp.concatenate(attn_h, axis=-1))   # [seq, n_heads*seq]
        ctx_rows.append(jnp.concatenate(ctx_h, axis=-1))     # [seq, n_heads*d_v]

    ctx_all = jnp.concatenate(ctx_rows, axis=0)     # [n, n_heads*d_v]
    attn_all = jnp.concatenate(attn_rows, axis=0)   # [n, n_heads*seq]

    # Single output projection for all batches/heads + residual.
    out = residual + jnp.dot(ctx_all, wfc_ref[...],
                             preferred_element_type=jnp.float32)   # [n, d_model]

    # LayerNorm(d_model) with gamma=1, beta=0 (fresh nn.LayerNorm in forward()).
    mean = jnp.mean(out, axis=-1, keepdims=True)
    var = jnp.mean((out - mean) ** 2, axis=-1, keepdims=True)

    # Exactly one wide store per output ref.
    out_ref[...] = (out - mean) * jax.lax.rsqrt(var + LN_EPS)
    attn_ref[...] = attn_all


def multi_head_attention(input_q, input_k, input_v, w_q, w_k, w_v, w_fc):
    """input_*: [B, L, d_model] f32.  w_q/w_k/w_v: [n_heads*d_k, d_model],
    w_fc: [d_model, n_heads*d_v] (PyTorch nn.Linear [out, in] layout)."""
    B, L, D = input_q.shape
    assert D == d_model
    n = B * L

    # Host-side weight prep (free): fold the 1/sqrt(d_k) softmax scale into Wq,
    # transpose so the kernel computes x @ W, and lane-concat Wq|Wk|Wv.
    scale = jnp.float32(1.0 / np.sqrt(d_k))
    wqkv = jnp.concatenate([(w_q * scale).T, w_k.T, w_v.T], axis=1)  # [D, 3*n_heads*d_k]
    wfc_t = w_fc.T                                                   # [n_heads*d_v, D]

    # Row-stack q/k/v inputs so the kernel does one fused projection matmul.
    x_stacked = jnp.stack([input_q.reshape(n, D),
                           input_k.reshape(n, D),
                           input_v.reshape(n, D)], axis=0)           # [3, n, D]

    # Advisory cost hint for XLA around this sub-microsecond custom call.
    flops = (2 * (3 * n) * d_model * (3 * n_heads * d_k)      # fused QKV projection
             + 2 * B * n_heads * L * L * (d_k + d_v)          # scores + context
             + 2 * n * (n_heads * d_v) * d_model              # output projection
             + 12 * n * d_model)                              # softmax/LN elementwise
    bytes_accessed = 4 * (3 * n * D + wqkv.size + wfc_t.size
                          + n * D + n * n_heads * L)
    cost = pl.CostEstimate(flops=flops,
                           transcendentals=B * n_heads * L * L,
                           bytes_accessed=bytes_accessed)

    vmem = lambda: pl.BlockSpec(memory_space=pltpu.MemorySpace.VMEM)
    out2, attn2 = pl.pallas_call(
        functools.partial(mha_kernel, B, L),
        # Single block, no grid: everything (a few KiB) lives in VMEM; no
        # pipeline/double-buffer machinery to pay for with nothing to overlap.
        in_specs=[vmem(), vmem(), vmem()],
        out_specs=(vmem(), vmem()),
        out_shape=(
            jax.ShapeDtypeStruct((n, d_model), jnp.float32),
            jax.ShapeDtypeStruct((n, n_heads * L), jnp.float32),  # lane-dense attn
        ),
        cost_estimate=cost,
    )(x_stacked, wqkv, wfc_t)

    out = out2.reshape(B, L, D)
    # Lane-dense slab -> (B, n_heads, L, L): row = b*L + q, lane = h*L + k.
    attn = attn2.reshape(B, L, n_heads, L).transpose(0, 2, 1, 3)
    return out, attn


def reference(input_q, input_k, input_v, w_q, w_k, w_v, w_fc):
    """Pure-JAX reference mirroring the PyTorch module."""
    B, L, D = input_q.shape
    Q = (input_q @ w_q.T).reshape(B, L, n_heads, d_k).transpose(0, 2, 1, 3)
    K = (input_k @ w_k.T).reshape(B, L, n_heads, d_k).transpose(0, 2, 1, 3)
    V = (input_v @ w_v.T).reshape(B, L, n_heads, d_v).transpose(0, 2, 1, 3)
    scores = jnp.einsum("bhqd,bhkd->bhqk", Q, K) / np.sqrt(d_k)
    attn = jax.nn.softmax(scores, axis=-1)
    ctx = jnp.einsum("bhqk,bhkd->bhqd", attn, V)
    ctx = ctx.transpose(0, 2, 1, 3).reshape(B, L, n_heads * d_v)
    out = ctx @ w_fc.T + input_q
    mean = jnp.mean(out, axis=-1, keepdims=True)
    var = jnp.mean((out - mean) ** 2, axis=-1, keepdims=True)
    return (out - mean) / jnp.sqrt(var + LN_EPS), attn


if __name__ == "__main__":
    key = jax.random.PRNGKey(0)
    kq, kk, kv, kwq, kwk, kwv, kwfc = jax.random.split(key, 7)

    B, L = 2, 8
    input_q = jax.random.normal(kq, (B, L, d_model), dtype=jnp.float32)
    input_k = jax.random.normal(kk, (B, L, d_model), dtype=jnp.float32)
    input_v = jax.random.normal(kv, (B, L, d_model), dtype=jnp.float32)

    # nn.Linear weights: [out_features, in_features], deterministic init
    w_q = jax.random.normal(kwq, (n_heads * d_k, d_model), dtype=jnp.float32) * 0.1
    w_k = jax.random.normal(kwk, (n_heads * d_k, d_model), dtype=jnp.float32) * 0.1
    w_v = jax.random.normal(kwv, (n_heads * d_v, d_model), dtype=jnp.float32) * 0.1
    w_fc = jax.random.normal(kwfc, (d_model, n_heads * d_v), dtype=jnp.float32) * 0.1

    out, attn = multi_head_attention(input_q, input_k, input_v, w_q, w_k, w_v, w_fc)
    jax.block_until_ready((out, attn))

    ref_out, ref_attn = reference(input_q, input_k, input_v, w_q, w_k, w_v, w_fc)
    # Softmax is exact now (no approx reciprocal), so the tolerance is back to 1e-4
    # (residual slack only for MXU f32 accumulation-order differences).
    ok_out = np.allclose(np.asarray(out), np.asarray(ref_out), atol=1e-4, rtol=1e-4)
    ok_attn = np.allclose(np.asarray(attn), np.asarray(ref_attn), atol=1e-4, rtol=1e-4)
    assert ok_out and ok_attn, "Pallas kernel mismatch vs reference"

    print("KERNEL_OK")
</pallas_src>

<mosaic_0001>
module attributes {stable_mosaic.version = 11 : i64} {
  func.func @mha_kernel(%arg0: memref<3x16x27xf32, #tpu.memory_space<vmem>>, %arg1: memref<27x81xf32, #tpu.memory_space<vmem>>, %arg2: memref<27x27xf32, #tpu.memory_space<vmem>>, %arg3: memref<16x27xf32, #tpu.memory_space<vmem>>, %arg4: memref<16x24xf32, #tpu.memory_space<vmem>>) attributes {dimension_semantics = [], scalar_prefetch = 0 : i64, scratch_operands = 0 : i64, tpu.core_type = #tpu.core_type<tc>} {
    %c0 = arith.constant 0 : index
    %c0_0 = arith.constant 0 : index
    %c0_1 = arith.constant 0 : index
    %0 = vector.load %arg0[%c0, %c0_0, %c0_1] : memref<3x16x27xf32, #tpu.memory_space<vmem>>, vector<3x16x27xf32>
    %1 = vector.extract_strided_slice %0 {offsets = [0, 0, 0], sizes = [1, 16, 27], strides = [1, 1, 1]} : vector<3x16x27xf32> to vector<1x16x27xf32>
    %2 = vector.shape_cast %1 : vector<1x16x27xf32> to vector<16x27xf32>
    %3 = vector.shape_cast %0 : vector<3x16x27xf32> to vector<48x27xf32>
    %c0_2 = arith.constant 0 : index
    %c0_3 = arith.constant 0 : index
    %4 = vector.load %arg1[%c0_2, %c0_3] : memref<27x81xf32, #tpu.memory_space<vmem>>, vector<27x81xf32>
    %cst = arith.constant dense<0.000000e+00> : vector<48x81xf32>
    %5 = tpu.matmul %3, %4, %cst {dimension_numbers = #tpu.dot_dimension_numbers<[1], [0], [0], [1], [0, 0, 1, 1], [], []>} : vector<48x27xf32>, vector<27x81xf32>, vector<48x81xf32> -> vector<48x81xf32>
    %6 = vector.extract_strided_slice %5 {offsets = [0, 0], sizes = [16, 27], strides = [1, 1]} : vector<48x81xf32> to vector<16x27xf32>
    %7 = vector.extract_strided_slice %5 {offsets = [16, 27], sizes = [16, 27], strides = [1, 1]} : vector<48x81xf32> to vector<16x27xf32>
    %8 = vector.extract_strided_slice %5 {offsets = [32, 54], sizes = [16, 27], strides = [1, 1]} : vector<48x81xf32> to vector<16x27xf32>
    %9 = vector.extract_strided_slice %6 {offsets = [0, 0], sizes = [8, 27], strides = [1, 1]} : vector<16x27xf32> to vector<8x27xf32>
    %10 = vector.extract_strided_slice %7 {offsets = [0, 0], sizes = [8, 27], strides = [1, 1]} : vector<16x27xf32> to vector<8x27xf32>
    %11 = vector.extract_strided_slice %8 {offsets = [0, 0], sizes = [8, 27], strides = [1, 1]} : vector<16x27xf32> to vector<8x27xf32>
    %12 = vector.extract_strided_slice %9 {offsets = [0, 0], sizes = [8, 9], strides = [1, 1]} : vector<8x27xf32> to vector<8x9xf32>
    %13 = vector.extract_strided_slice %10 {offsets = [0, 0], sizes = [8, 9], strides = [1, 1]} : vector<8x27xf32> to vector<8x9xf32>
    %14 = vector.extract_strided_slice %11 {offsets = [0, 0], sizes = [8, 9], strides = [1, 1]} : vector<8x27xf32> to vector<8x9xf32>
    %cst_4 = arith.constant dense<0.000000e+00> : vector<8x8xf32>
    %15 = tpu.matmul %12, %13, %cst_4 {dimension_numbers = #tpu.dot_dimension_numbers<[1], [1], [0], [0], [0, 0, 1, 0], [], []>} : vector<8x9xf32>, vector<8x9xf32>, vector<8x8xf32> -> vector<8x8xf32>
    %cst_5 = arith.constant dense<0xFF800000> : vector<8xf32>
    %16 = vector.multi_reduction <maximumf>, %15, %cst_5 [1] : vector<8x8xf32> to vector<8xf32>
    %17 = vector.shape_cast %16 : vector<8xf32> to vector<8x1xf32>
    %18 = vector.broadcast %17 : vector<8x1xf32> to vector<8x8xf32>
    %19 = arith.subf %15, %18 : vector<8x8xf32>
    %20 = math.exp %19 : vector<8x8xf32>
    %cst_6 = arith.constant dense<0.000000e+00> : vector<8xf32>
    %21 = vector.multi_reduction <add>, %20, %cst_6 [1] : vector<8x8xf32> to vector<8xf32>
    %22 = vector.shape_cast %21 : vector<8xf32> to vector<8x1xf32>
    %23 = vector.broadcast %22 : vector<8x1xf32> to vector<8x8xf32>
    %24 = arith.divf %20, %23 : vector<8x8xf32>
    %cst_7 = arith.constant dense<0.000000e+00> : vector<8x9xf32>
    %25 = tpu.matmul %24, %14, %cst_7 {dimension_numbers = #tpu.dot_dimension_numbers<[1], [0], [0], [1], [0, 0, 1, 1], [], []>} : vector<8x8xf32>, vector<8x9xf32>, vector<8x9xf32> -> vector<8x9xf32>
    %26 = vector.extract_strided_slice %9 {offsets = [0, 9], sizes = [8, 9], strides = [1, 1]} : vector<8x27xf32> to vector<8x9xf32>
    %27 = vector.extract_strided_slice %10 {offsets = [0, 9], sizes = [8, 9], strides = [1, 1]} : vector<8x27xf32> to vector<8x9xf32>
    %28 = vector.extract_strided_slice %11 {offsets = [0, 9], sizes = [8, 9], strides = [1, 1]} : vector<8x27xf32> to vector<8x9xf32>
    %cst_8 = arith.constant dense<0.000000e+00> : vector<8x8xf32>
    %29 = tpu.matmul %26, %27, %cst_8 {dimension_numbers = #tpu.dot_dimension_numbers<[1], [1], [0], [0], [0, 0, 1, 0], [], []>} : vector<8x9xf32>, vector<8x9xf32>, vector<8x8xf32> -> vector<8x8xf32>
    %cst_9 = arith.constant dense<0xFF800000> : vector<8xf32>
    %30 = vector.multi_reduction <maximumf>, %29, %cst_9 [1] : vector<8x8xf32> to vector<8xf32>
    %31 = vector.shape_cast %30 : vector<8xf32> to vector<8x1xf32>
    %32 = vector.broadcast %31 : vector<8x1xf32> to vector<8x8xf32>
    %33 = arith.subf %29, %32 : vector<8x8xf32>
    %34 = math.exp %33 : vector<8x8xf32>
    %cst_10 = arith.constant dense<0.000000e+00> : vector<8xf32>
    %35 = vector.multi_reduction <add>, %34, %cst_10 [1] : vector<8x8xf32> to vector<8xf32>
    %36 = vector.shape_cast %35 : vector<8xf32> to vector<8x1xf32>
    %37 = vector.broadcast %36 : vector<8x1xf32> to vector<8x8xf32>
    %38 = arith.divf %34, %37 : vector<8x8xf32>
    %cst_11 = arith.constant dense<0.000000e+00> : vector<8x9xf32>
    %39 = tpu.matmul %38, %28, %cst_11 {dimension_numbers = #tpu.dot_dimension_numbers<[1], [0], [0], [1], [0, 0, 1, 1], [], []>} : vector<8x8xf32>, vector<8x9xf32>, vector<8x9xf32> -> vector<8x9xf32>
    %40 = vector.extract_strided_slice %9 {offsets = [0, 18], sizes = [8, 9], strides = [1, 1]} : vector<8x27xf32> to vector<8x9xf32>
    %41 = vector.extract_strided_slice %10 {offsets = [0, 18], sizes = [8, 9], strides = [1, 1]} : vector<8x27xf32> to vector<8x9xf32>
    %42 = vector.extract_strided_slice %11 {offsets = [0, 18], sizes = [8, 9], strides = [1, 1]} : vector<8x27xf32> to vector<8x9xf32>
    %cst_12 = arith.constant dense<0.000000e+00> : vector<8x8xf32>
    %43 = tpu.matmul %40, %41, %cst_12 {dimension_numbers = #tpu.dot_dimension_numbers<[1], [1], [0], [0], [0, 0, 1, 0], [], []>} : vector<8x9xf32>, vector<8x9xf32>, vector<8x8xf32> -> vector<8x8xf32>
    %cst_13 = arith.constant dense<0xFF800000> : vector<8xf32>
    %44 = vector.multi_reduction <maximumf>, %43, %cst_13 [1] : vector<8x8xf32> to vector<8xf32>
    %45 = vector.shape_cast %44 : vector<8xf32> to vector<8x1xf32>
    %46 = vector.broadcast %45 : vector<8x1xf32> to vector<8x8xf32>
    %47 = arith.subf %43, %46 : vector<8x8xf32>
    %48 = math.exp %47 : vector<8x8xf32>
    %cst_14 = arith.constant dense<0.000000e+00> : vector<8xf32>
    %49 = vector.multi_reduction <add>, %48, %cst_14 [1] : vector<8x8xf32> to vector<8xf32>
    %50 = vector.shape_cast %49 : vector<8xf32> to vector<8x1xf32>
    %51 = vector.broadcast %50 : vector<8x1xf32> to vector<8x8xf32>
    %52 = arith.divf %48, %51 : vector<8x8xf32>
    %cst_15 = arith.constant dense<0.000000e+00> : vector<8x9xf32>
    %53 = tpu.matmul %52, %42, %cst_15 {dimension_numbers = #tpu.dot_dimension_numbers<[1], [0], [0], [1], [0, 0, 1, 1], [], []>} : vector<8x8xf32>, vector<8x9xf32>, vector<8x9xf32> -> vector<8x9xf32>
    %54 = tpu.concatenate %24, %38, %52 in 1 : vector<8x8xf32>, vector<8x8xf32>, vector<8x8xf32> -> vector<8x24xf32>
    %55 = tpu.concatenate %25, %39, %53 in 1 : vector<8x9xf32>, vector<8x9xf32>, vector<8x9xf32> -> vector<8x27xf32>
    %56 = vector.extract_strided_slice %6 {offsets = [8, 0], sizes = [8, 27], strides = [1, 1]} : vector<16x27xf32> to vector<8x27xf32>
    %57 = vector.extract_strided_slice %7 {offsets = [8, 0], sizes = [8, 27], strides = [1, 1]} : vector<16x27xf32> to vector<8x27xf32>
    %58 = vector.extract_strided_slice %8 {offsets = [8, 0], sizes = [8, 27], strides = [1, 1]} : vector<16x27xf32> to vector<8x27xf32>
    %59 = vector.extract_strided_slice %56 {offsets = [0, 0], sizes = [8, 9], strides = [1, 1]} : vector<8x27xf32> to vector<8x9xf32>
    %60 = vector.extract_strided_slice %57 {offsets = [0, 0], sizes = [8, 9], strides = [1, 1]} : vector<8x27xf32> to vector<8x9xf32>
    %61 = vector.extract_strided_slice %58 {offsets = [0, 0], sizes = [8, 9], strides = [1, 1]} : vector<8x27xf32> to vector<8x9xf32>
    %cst_16 = arith.constant dense<0.000000e+00> : vector<8x8xf32>
    %62 = tpu.matmul %59, %60, %cst_16 {dimension_numbers = #tpu.dot_dimension_numbers<[1], [1], [0], [0], [0, 0, 1, 0], [], []>} : vector<8x9xf32>, vector<8x9xf32>, vector<8x8xf32> -> vector<8x8xf32>
    %cst_17 = arith.constant dense<0xFF800000> : vector<8xf32>
    %63 = vector.multi_reduction <maximumf>, %62, %cst_17 [1] : vector<8x8xf32> to vector<8xf32>
    %64 = vector.shape_cast %63 : vector<8xf32> to vector<8x1xf32>
    %65 = vector.broadcast %64 : vector<8x1xf32> to vector<8x8xf32>
    %66 = arith.subf %62, %65 : vector<8x8xf32>
    %67 = math.exp %66 : vector<8x8xf32>
    %cst_18 = arith.constant dense<0.000000e+00> : vector<8xf32>
    %68 = vector.multi_reduction <add>, %67, %cst_18 [1] : vector<8x8xf32> to vector<8xf32>
    %69 = vector.shape_cast %68 : vector<8xf32> to vector<8x1xf32>
    %70 = vector.broadcast %69 : vector<8x1xf32> to vector<8x8xf32>
    %71 = arith.divf %67, %70 : vector<8x8xf32>
    %cst_19 = arith.constant dense<0.000000e+00> : vector<8x9xf32>
    %72 = tpu.matmul %71, %61, %cst_19 {dimension_numbers = #tpu.dot_dimension_numbers<[1], [0], [0], [1], [0, 0, 1, 1], [], []>} : vector<8x8xf32>, vector<8x9xf32>, vector<8x9xf32> -> vector<8x9xf32>
    %73 = vector.extract_strided_slice %56 {offsets = [0, 9], sizes = [8, 9], strides = [1, 1]} : vector<8x27xf32> to vector<8x9xf32>
    %74 = vector.extract_strided_slice %57 {offsets = [0, 9], sizes = [8, 9], strides = [1, 1]} : vector<8x27xf32> to vector<8x9xf32>
    %75 = vector.extract_strided_slice %58 {offsets = [0, 9], sizes = [8, 9], strides = [1, 1]} : vector<8x27xf32> to vector<8x9xf32>
    %cst_20 = arith.constant dense<0.000000e+00> : vector<8x8xf32>
    %76 = tpu.matmul %73, %74, %cst_20 {dimension_numbers = #tpu.dot_dimension_numbers<[1], [1], [0], [0], [0, 0, 1, 0], [], []>} : vector<8x9xf32>, vector<8x9xf32>, vector<8x8xf32> -> vector<8x8xf32>
    %cst_21 = arith.constant dense<0xFF800000> : vector<8xf32>
    %77 = vector.multi_reduction <maximumf>, %76, %cst_21 [1] : vector<8x8xf32> to vector<8xf32>
    %78 = vector.shape_cast %77 : vector<8xf32> to vector<8x1xf32>
    %79 = vector.broadcast %78 : vector<8x1xf32> to vector<8x8xf32>
    %80 = arith.subf %76, %79 : vector<8x8xf32>
    %81 = math.exp %80 : vector<8x8xf32>
    %cst_22 = arith.constant dense<0.000000e+00> : vector<8xf32>
    %82 = vector.multi_reduction <add>, %81, %cst_22 [1] : vector<8x8xf32> to vector<8xf32>
    %83 = vector.shape_cast %82 : vector<8xf32> to vector<8x1xf32>
    %84 = vector.broadcast %83 : vector<8x1xf32> to vector<8x8xf32>
    %85 = arith.divf %81, %84 : vector<8x8xf32>
    %cst_23 = arith.constant dense<0.000000e+00> : vector<8x9xf32>
    %86 = tpu.matmul %85, %75, %cst_23 {dimension_numbers = #tpu.dot_dimension_numbers<[1], [0], [0], [1], [0, 0, 1, 1], [], []>} : vector<8x8xf32>, vector<8x9xf32>, vector<8x9xf32> -> vector<8x9xf32>
    %87 = vector.extract_strided_slice %56 {offsets = [0, 18], sizes = [8, 9], strides = [1, 1]} : vector<8x27xf32> to vector<8x9xf32>
    %88 = vector.extract_strided_slice %57 {offsets = [0, 18], sizes = [8, 9], strides = [1, 1]} : vector<8x27xf32> to vector<8x9xf32>
    %89 = vector.extract_strided_slice %58 {offsets = [0, 18], sizes = [8, 9], strides = [1, 1]} : vector<8x27xf32> to vector<8x9xf32>
    %cst_24 = arith.constant dense<0.000000e+00> : vector<8x8xf32>
    %90 = tpu.matmul %87, %88, %cst_24 {dimension_numbers = #tpu.dot_dimension_numbers<[1], [1], [0], [0], [0, 0, 1, 0], [], []>} : vector<8x9xf32>, vector<8x9xf32>, vector<8x8xf32> -> vector<8x8xf32>
    %cst_25 = arith.constant dense<0xFF800000> : vector<8xf32>
    %91 = vector.multi_reduction <maximumf>, %90, %cst_25 [1] : vector<8x8xf32> to vector<8xf32>
    %92 = vector.shape_cast %91 : vector<8xf32> to vector<8x1xf32>
    %93 = vector.broadcast %92 : vector<8x1xf32> to vector<8x8xf32>
    %94 = arith.subf %90, %93 : vector<8x8xf32>
    %95 = math.exp %94 : vector<8x8xf32>
    %cst_26 = arith.constant dense<0.000000e+00> : vector<8xf32>
    %96 = vector.multi_reduction <add>, %95, %cst_26 [1] : vector<8x8xf32> to vector<8xf32>
    %97 = vector.shape_cast %96 : vector<8xf32> to vector<8x1xf32>
    %98 = vector.broadcast %97 : vector<8x1xf32> to vector<8x8xf32>
    %99 = arith.divf %95, %98 : vector<8x8xf32>
    %cst_27 = arith.constant dense<0.000000e+00> : vector<8x9xf32>
    %100 = tpu.matmul %99, %89, %cst_27 {dimension_numbers = #tpu.dot_dimension_numbers<[1], [0], [0], [1], [0, 0, 1, 1], [], []>} : vector<8x8xf32>, vector<8x9xf32>, vector<8x9xf32> -> vector<8x9xf32>
    %101 = tpu.concatenate %71, %85, %99 in 1 : vector<8x8xf32>, vector<8x8xf32>, vector<8x8xf32> -> vector<8x24xf32>
    %102 = tpu.concatenate %72, %86, %100 in 1 : vector<8x9xf32>, vector<8x9xf32>, vector<8x9xf32> -> vector<8x27xf32>
    %103 = tpu.concatenate %55, %102 in 0 : vector<8x27xf32>, vector<8x27xf32> -> vector<16x27xf32>
    %104 = tpu.concatenate %54, %101 in 0 : vector<8x24xf32>, vector<8x24xf32> -> vector<16x24xf32>
    %c0_28 = arith.constant 0 : index
    %c0_29 = arith.constant 0 : index
    %105 = vector.load %arg2[%c0_28, %c0_29] : memref<27x27xf32, #tpu.memory_space<vmem>>, vector<27x27xf32>
    %cst_30 = arith.constant dense<0.000000e+00> : vector<16x27xf32>
    %106 = tpu.matmul %103, %105, %cst_30 {dimension_numbers = #tpu.dot_dimension_numbers<[1], [0], [0], [1], [0, 0, 1, 1], [], []>} : vector<16x27xf32>, vector<27x27xf32>, vector<16x27xf32> -> vector<16x27xf32>
    %107 = arith.addf %2, %106 : vector<16x27xf32>
    %cst_31 = arith.constant dense<0.000000e+00> : vector<16xf32>
    %108 = vector.multi_reduction <add>, %107, %cst_31 [1] : vector<16x27xf32> to vector<16xf32>
    %109 = vector.shape_cast %108 : vector<16xf32> to vector<16x1xf32>
    %cst_32 = arith.constant 2.700000e+01 : f32
    %110 = vector.broadcast %cst_32 : f32 to vector<16x1xf32>
    %111 = arith.divf %109, %110 : vector<16x1xf32>
    %112 = vector.broadcast %111 : vector<16x1xf32> to vector<16x27xf32>
    %113 = arith.subf %107, %112 : vector<16x27xf32>
    %114 = arith.mulf %113, %113 : vector<16x27xf32>
    %cst_33 = arith.constant dense<0.000000e+00> : vector<16xf32>
    %115 = vector.multi_reduction <add>, %114, %cst_33 [1] : vector<16x27xf32> to vector<16xf32>
    %116 = vector.shape_cast %115 : vector<16xf32> to vector<16x1xf32>
    %cst_34 = arith.constant 2.700000e+01 : f32
    %117 = vector.broadcast %cst_34 : f32 to vector<16x1xf32>
    %118 = arith.divf %116, %117 : vector<16x1xf32>
    %119 = vector.broadcast %111 : vector<16x1xf32> to vector<16x27xf32>
    %120 = arith.subf %107, %119 : vector<16x27xf32>
    %cst_35 = arith.constant 9.99999974E-6 : f32
    %121 = vector.broadcast %cst_35 : f32 to vector<16x1xf32>
    %122 = arith.addf %118, %121 : vector<16x1xf32>
    %123 = math.rsqrt %122 : vector<16x1xf32>
    %124 = vector.broadcast %123 : vector<16x1xf32> to vector<16x27xf32>
    %125 = arith.mulf %120, %124 : vector<16x27xf32>
    %c0_36 = arith.constant 0 : index
    %c0_37 = arith.constant 0 : index
    %126 = vector.load %arg3[%c0_36, %c0_37] : memref<16x27xf32, #tpu.memory_space<vmem>>, vector<16x27xf32>
    tpu.vector_store %arg3[%c0_36, %c0_37], %125 {strides = array<i32>} : memref<16x27xf32, #tpu.memory_space<vmem>>, vector<16x27xf32>,
    %c0_38 = arith.constant 0 : index
    %c0_39 = arith.constant 0 : index
    %127 = vector.load %arg4[%c0_38, %c0_39] : memref<16x24xf32, #tpu.memory_space<vmem>>, vector<16x24xf32>
    tpu.vector_store %arg4[%c0_38, %c0_39], %104 {strides = array<i32>} : memref<16x24xf32, #tpu.memory_space<vmem>>, vector<16x24xf32>,
    return
  }
}

</mosaic_0001>

<bundles_post_ra>
// kernel: tpu_custom_call.1
= control target key start
LH: loop header
LB: loop body
LE: loop exit
PB: predicated region body
PF: predicated region fallthrough
CT: control target
= control target key end

     0   :  { %10 = vsyncpa [#allocation3], 0  ;;  %s1930_s0 = inlined_call_operand.hbm [shape: f32[3,16,27], index: 0, kind: input, shape index: {}]   ;;  %s1931_s1 = inlined_call_operand.hbm [shape: f32[27,81], index: 1, kind: input, shape index: {}]   ;;  %s1932_s2 = inlined_call_operand.hbm [shape: f32[27,27], index: 2, kind: input, shape index: {}]   ;;  %s1933_s3 = inlined_call_operand.hbm [shape: f32[16,27], index: 3, kind: output, shape index: {0}]   ;;  %s1934_s4 = inlined_call_operand.hbm [shape: f32[16,24], index: 4, kind: output, shape index: {1}]  }
   0x1   :  { %11 = vsyncpa [#allocation6], 0 }
   0x2   :  { %12 = vsyncpa [#allocation4], 0 }
   0x3   :  { %13 = vsyncpa [#allocation10], 0  ;;  %s1687_s15 = smov [#allocation5]   ;;  %s1688_s17 = smov [#allocation2]  }
   0x4   :  { %s31_s16 = sshll.u32 %s1687_s15, 4  ;;  %s19_s18 = sshll.u32 %s1688_s17, 4  ;;  %s32_s16 = int_to_ptr.vmem [resolvable:$true] %s31_s16  ;;  %s20_s18 = int_to_ptr.vmem [resolvable:$true] %s19_s18 }
   0x5   :  { %s1587_s19 = scalar_lea.vmem %s32_s16, 512  ;;  %p1592_p1 = scmp.lt.s32.totalorder %s32_s16, %s32_s16 }
   0x6   :  { %p1588_p0 = scmp.ne.s32.totalorder %s32_s16, %s1587_s19  ;;  %p1593_p2 = scmp.lt.s32.totalorder %s1587_s19, %s1587_s19 }
   0x8   :  { %p1594_p3 = por %p1593_p2, %p1592_p1 }
   0xa   :  { %p1595_p4 = pnand %p1594_p3, %p1588_p0 }
   0xc   :  { %1598 = shalt.err (!%p1595_p4)
}
   0xd   :  { %s1689_s20 = smov 128   ;;  %s1690_s21 = smov 8  }
   0xe   :  { %37 = dma.hbm_to_vmem [thread:$0]  %s1931_s1, 512, %s32_s16, [#allocation6], %s1689_s20, %s1689_s20, %s1690_s21  }
   0xf   :  { %s1607_s24 = scalar_lea.vmem %s20_s18, 768  ;;  %p1612_p6 = scmp.lt.s32.totalorder %s20_s18, %s20_s18 }
  0x10   :  { %p1608_p5 = scmp.ne.s32.totalorder %s20_s18, %s1607_s24  ;;  %p1613_p7 = scmp.lt.s32.totalorder %s1607_s24, %s1607_s24 }
  0x12   :  { %p1614_p8 = por %p1613_p7, %p1612_p6 }
  0x14   :  { %p1615_p9 = pnand %p1614_p8, %p1608_p5 }
  0x16   :  { %1618 = shalt.err (!%p1615_p9)
}
  0x17   :  { %25 = dma.hbm_to_vmem [thread:$0]  %s1930_s0, 768, %s20_s18, [#allocation3], %s1689_s20, %s1689_s20, %s1690_s21  }
  0x18   :  { %s1691_s27 = smov [#allocation7]  }
  0x19   :  { %s43_s28 = sshll.u32 %s1691_s27, 4  ;;  %s44_s28 = int_to_ptr.vmem [resolvable:$true] %s43_s28 }
  0x1a   :  { %s1627_s29 = scalar_lea.vmem %s44_s28, 512  ;;  %p1632_p11 = scmp.lt.s32.totalorder %s44_s28, %s44_s28 }
  0x1b   :  { %p1628_p10 = scmp.ne.s32.totalorder %s44_s28, %s1627_s29  ;;  %p1633_p12 = scmp.lt.s32.totalorder %s1627_s29, %s1627_s29 }
  0x1d   :  { %p1634_p13 = por %p1633_p12, %p1632_p11 }
  0x1f   :  { %p1635_p0 = pnand %p1634_p13, %p1628_p10 }
  0x21   :  { %1638 = shalt.err (!%p1635_p0)
}
  0x22   :  { %49 = dma.hbm_to_vmem [thread:$0]  %s1932_s2, 512, %s44_s28, [#allocation6], %s1689_s20, %s1689_s20, %s1690_s21  }
  0x23   :  { %1679 = dma.done.wait [#allocation3], 768  }
  0x24   :  { %1680 = vsyncadd [#allocation3], 4294966528 }
  0x25   :  { %1681 = dma.done.wait [#allocation6], 1024  }
  0x26   :  { %1682 = vsyncadd [#allocation6], 4294966272  ;;  %vm88_vm0 = vcmask 1042432   ;;  %vm69_vm1 = vcmask 220160   ;;  %v68_v0 = vld [vmem:[#allocation5 + $0x18] sm:$0x7] }
  0x27   :  { %v67_v1 = vld [vmem:[#allocation5 + $0x10] sm:$0xff]  ;;  %1443 = vmatprep.subr.msk.mxu0 %vm88_vm0, %v68_v0  ;;  %v66_v3 = vld [vmem:[#allocation5 + $0x8] sm:$0xff]  ;;  %v65_v4 = vld [vmem:[#allocation5] sm:$0xff]  ;;  %v1692_v10 = vmov 0.0   ;;  %vm1693_vm2 = vmmov 0   ;;  %s1694_s0 = smov 101  }
  0x28   :  { %v1751_v2 = vld [vmem:[#allocation2] sm:$0xff]  ;;  %1444 = vmatpush3.msk.msra.mxu0 %vm88_vm0, %v68_v0  ;;  %v1756_v5 = vld [vmem:[#allocation2 + $0x8] sm:$0xff]  ;;  %v61_v6 = vld [vmem:[#allocation2 + $0x10] sm:$0xff]  ;;  %1460 = vmatprep.subr.mxu1 %v1692_v10  ;;  %s1695_s2 = smov 74   ;;  %s1696_s5 = smov 92   ;;  %vm190_vm3 = vcmask 72704  }
  0x29   :  { %1451 = vmatprep.mubr.msk.f32.mxu0 %vm69_vm1, %v1751_v2  ;;  %1445 = vmatprep.subr.mxu0 %v67_v1  ;;  %v62_v7 = vld [vmem:[#allocation2 + $0x18] sm:$0xff]  ;;  %v63_v8 = vld [vmem:[#allocation2 + $0x20] sm:$0xff]  ;;  %v64_v9 = vld [vmem:[#allocation2 + $0x28] sm:$0xff]  ;;  %vm266_vm4 = vcmask 64512   ;;  %s1697_s6 = smov 65   ;;  %s1698_s7 = smov 83  }
  0x2a   :  { %1446 = vmatpush3.msra.mxu0 %v67_v1  ;;  %1462 = vmatprep.mubr.msk.f32.mxu1 %vm1693_vm2, %v1692_v10  ;;  %s1699_s8 = smov 119   ;;  %s1700_s9 = smov 110   ;;  %vm703_vm5 = vcmask 146432   ;;  %vm692_vm6 = vcmask 130048   ;;  %vm1338_vm7 = vcmask 195584  }
  0x2b   :  { %1447 = vmatprep.subr.mxu0 %v66_v3  ;;  %s1701_s10 = smov 56   ;;  %s1702_s11 = smov 9  }
  0x2c   :  { %1448 = vmatpush3.msra.mxu0 %v66_v3  ;;  %s1703_s12 = smov 18   ;;  %s1704_s13 = smov 16  }
  0x2d   :  { %1449 = vmatprep.subr.mxu0 %v65_v4  ;;  %s1705_s14 = smov [#allocation9]  }
  0x2e   :  { %1450 = vmatpush3.msra.mxu0 %v65_v4  ;;  %s1358_s15 = sshll.u32 %s1705_s14, 4  ;;  %s1359_s15 = int_to_ptr.vmem [resolvable:$true] %s1358_s15 }
  0x2f   :  { %1452 = vmatmul.mubr.msk.f32.vlgmr.msra.gmra.mxu0 %vm69_vm1, %v1756_v5  ;;  %1490 = vmatprep.subr.mxu0 %v1692_v10  ;;  %s1639_s16 = scalar_lea.vmem %s1359_s15, 256  ;;  %p1644_p2 = scmp.lt.s32.totalorder %s1359_s15, %s1359_s15 }
  0x30   :  { %1454 = vmatprep.mubr.msk.f32.mxu0 %vm69_vm1, %v61_v6  ;;  %p1640_p1 = scmp.ne.s32.totalorder %s1359_s15, %s1639_s16  ;;  %p1645_p3 = scmp.lt.s32.totalorder %s1639_s16, %s1639_s16 }
  0x32   :  { %p1646_p4 = por %p1645_p3, %p1644_p2 }
  0x33   :  { %1455 = vmatmul.mubr.msk.f32.gmra.mxu0 %vm69_vm1, %v62_v7 }
  0x34   :  { %1457 = vmatprep.mubr.msk.f32.mxu0 %vm69_vm1, %v63_v8  ;;  %p1647_p5 = pnand %p1646_p4, %p1640_p1 }
  0x37   :  { %1458 = vmatmul.mubr.msk.f32.gmra.mxu0 %vm69_vm1, %v64_v9 }
  0x38   :  { %1492 = vmatprep.mubr.msk.f32.mxu0 %vm1693_vm2, %v1692_v10 }
  0xef   :  { %v1770_v11 = vpop.f32.mrf.mxu0 }
  0xf1   :  { %v1772_v12 = vpop.f32.mrf.mxu0 }
  0xf3   :  { %v1774_v13 = vpop.f32.mrf.mxu0 }
  0xf5   :  { %v168_v14 = vpop.f32.mrf.mxu0 }
  0xf6   :  { %188 = vrot.lane.b32.xlu0 %v168_v14, %s1694_s0 }
  0xf7   :  { %v1777_v15 = vpop.f32.mrf.mxu0 }
  0xf9   :  { %v1779_v16 = vpop.f32.mrf.mxu0 }
  0xfa   :  { %279 = vrot.lane.b32.xlu1 %v1779_v16, %s1695_s2 }
  0xfe   :  { %357 = vrot.lane.b32.xlu1 %v168_v14, %s1696_s5 }
 0x168   :  { %v189_v17 = vpop.permute.xlu0 %188 }
 0x169   :  { %1461 = vmatpush3.xpose.msk.msra.mxu1 %vm190_vm3, %v189_v17 }
 0x16a   :  { %1465 = vmatprep.subr.mxu1 %v1692_v10 }
 0x16c   :  { %1463 = vmatmul.mubr.msk.f32.vlgmr.msra.gmra.mxu1 %vm190_vm3, %v1772_v12  ;;  %v280_v18 = vpop.permute.xlu1 %279 }
 0x16d   :  { %1466 = vmatpush3.msra.mxu1 %v280_v18  ;;  %1467 = vmatprep.mubr.msk.f32.mxu1 %vm1693_vm2, %v1692_v10 }
 0x16e   :  { %1470 = vmatprep.subr.mxu1 %v1692_v10 }
 0x170   :  { %v358_v27 = vpop.permute.xlu1 %357 }
 0x22c   :  { %v262_v19 = vpop.f32.mrf.mxu1 }
 0x22d   :  { %v267_v20 = vsel %vm266_vm4, %v262_v19, -inf }
 0x22e   :  { %268 = vmax.xlane.f32.xlu0 %v267_v20  ;;  %v1464_v21 = vpop.f32.mrf.mxu1 }
 0x244   :  { %444 = vrot.lane.b32.xlu0 %v1779_v16, %s1697_s6 }
 0x248   :  { %522 = vrot.lane.b32.xlu0 %v168_v14, %s1698_s7 }
 0x2b7   :  { %v269_v22 = vpop.xlane.xlu0 %268 }
 0x2b8   :  { %v270_v23 = vsub.f32 %v262_v19, %v269_v22 }
 0x2ba   :  { %v271_v24 = vmul.f32 1.442695, %v270_v23 }
 0x2bb   :  { %v445_v32 = vpop.permute.xlu0 %444 }
 0x2bc   :  { %1551 = vpow2.f32 %v271_v24 }
 0x2bf   :  { %v523_v44 = vpop.permute.xlu0 %522 }
 0x2c9   :  { %v1552_v25 = vpop.eup %1551 }
 0x2ca   :  { %v273_v26 = vsel %vm266_vm4, %v1552_v25, 0.0 }
 0x2cb   :  { %274 = vadd.xlane.f32.xlu1 %v273_v26 }
 0x2dc   :  { %355 = vrot.lane.b32.xlu1 %v1772_v12, %s1699_s8 }
 0x354   :  { %v275_v28 = vpop.xlane.xlu1 %274 }
 0x355   :  { %1553 = vrcp.f32 %v275_v28 }
 0x358   :  { %v356_v31 = vpop.permute.xlu1 %355 }
 0x362   :  { %v1554_v29 = vpop.eup %1553 }
 0x363   :  { %v1798_v30 = vmul.f32 %v1554_v29, %v1552_v25 }
 0x365   :  { %1468 = vmatmul.mubr.msk.f32.vlgmr.msra.gmra.mxu1 %vm266_vm4, %v1798_v30 }
 0x366   :  { %1471 = vmatpush3.xpose.msk.msra.mxu1 %vm190_vm3, %v358_v27  ;;  %1472 = vmatprep.mubr.msk.f32.mxu1 %vm1693_vm2, %v1692_v10 }
 0x367   :  { %1475 = vmatprep.subr.mxu1 %v1692_v10 }
 0x369   :  { %1473 = vmatmul.mubr.msk.f32.vlgmr.msra.gmra.mxu1 %vm190_vm3, %v356_v31 }
 0x36a   :  { %1476 = vmatpush3.msra.mxu1 %v445_v32  ;;  %1477 = vmatprep.mubr.msk.f32.mxu1 %vm1693_vm2, %v1692_v10 }
 0x36b   :  { %1480 = vmatprep.subr.mxu1 %v1692_v10 }
 0x425   :  { %v1810_v33 = vpop.f32.mrf.mxu1 }
 0x427   :  { %v1469_v34 = vpop.f32.mrf.mxu1 }
 0x429   :  { %v429_v35 = vpop.f32.mrf.mxu1 }
 0x42a   :  { %v433_v36 = vsel %vm266_vm4, %v429_v35, -inf }
 0x42b   :  { %434 = vmax.xlane.f32.xlu1 %v433_v36  ;;  %v1474_v37 = vpop.f32.mrf.mxu1 }
 0x43c   :  { %706 = vrot.lane.b32.xlu1 %v1774_v13, %s1694_s0 }
 0x4b4   :  { %v435_v38 = vpop.xlane.xlu1 %434 }
 0x4b5   :  { %v436_v39 = vsub.f32 %v429_v35, %v435_v38 }
 0x4b7   :  { %v437_v40 = vmul.f32 1.442695, %v436_v39 }
 0x4b8   :  { %v707_v41 = vpop.permute.xlu1 %706 }
 0x4b9   :  { %1555 = vpow2.f32 %v437_v40  ;;  %1491 = vmatpush3.xpose.msk.msra.mxu0 %vm190_vm3, %v707_v41 }
 0x4ba   :  { %1500 = vmatprep.subr.mxu0 %v1692_v10 }
 0x4bc   :  { %1493 = vmatmul.mubr.msk.f32.vlgmr.msra.gmra.mxu0 %vm190_vm3, %v1770_v11 }
 0x4bd   :  { %1502 = vmatprep.mubr.msk.f32.mxu0 %vm1693_vm2, %v1692_v10 }
 0x4c6   :  { %v1556_v42 = vpop.eup %1555 }
 0x4c7   :  { %v439_v43 = vsel %vm266_vm4, %v1556_v42, 0.0 }
 0x4c8   :  { %440 = vadd.xlane.f32.xlu0 %v439_v43 }
 0x4de   :  { %520 = vrot.lane.b32.xlu0 %v1772_v12, %s1700_s9 }
 0x4e2   :  { %873 = vrot.lane.b32.xlu0 %v1774_v13, %s1696_s5 }
 0x4e6   :  { %871 = vrot.lane.b32.xlu0 %v1770_v11, %s1699_s8 }
 0x4ea   :  { %1038 = vrot.lane.b32.xlu0 %v1774_v13, %s1698_s7 }
 0x4ee   :  { %1036 = vrot.lane.b32.xlu0 %v1770_v11, %s1700_s9 }
 0x551   :  { %v441_v45 = vpop.xlane.xlu0 %440 }
 0x552   :  { %1557 = vrcp.f32 %v441_v45  ;;  %v1221_v45 = vld [vmem:[#allocation7 + $0x10] sm:$0xff] }
 0x555   :  { %v521_v46 = vpop.permute.xlu0 %520 }
 0x559   :  { %v874_v47 = vpop.permute.xlu0 %873 }
 0x55a   :  { %1501 = vmatpush3.xpose.msk.msra.mxu0 %vm190_vm3, %v874_v47  ;;  %v1219_v47 = vld [vmem:[#allocation7] sm:$0xff] }
 0x55b   :  { %1510 = vmatprep.subr.mxu0 %v1692_v10 }
 0x55d   :  { %v872_v48 = vpop.permute.xlu0 %871 }
 0x55e   :  { %1503 = vmatmul.mubr.msk.f32.vlgmr.msra.gmra.mxu0 %vm190_vm3, %v872_v48 }
 0x55f   :  { %v1558_v49 = vpop.eup %1557  ;;  %1512 = vmatprep.mubr.msk.f32.mxu0 %vm1693_vm2, %v1692_v10 }
 0x560   :  { %v1835_v50 = vmul.f32 %v1558_v49, %v1556_v42 }
 0x561   :  { %v1039_v51 = vpop.permute.xlu0 %1038 }
 0x562   :  { %1478 = vmatmul.mubr.msk.f32.vlgmr.msra.gmra.mxu1 %vm266_vm4, %v1835_v50  ;;  %1511 = vmatpush3.xpose.msk.msra.mxu0 %vm190_vm3, %v1039_v51 }
 0x563   :  { %1481 = vmatpush3.xpose.msk.msra.mxu1 %vm190_vm3, %v523_v44  ;;  %1482 = vmatprep.mubr.msk.f32.mxu1 %vm1693_vm2, %v1692_v10  ;;  %v1222_v44 = vld [vmem:[#allocation7 + $0x18] sm:$0x7] }
 0x564   :  { %1485 = vmatprep.subr.mxu1 %v1692_v10  ;;  %1520 = vmatprep.subr.msk.mxu0 %vm88_vm0, %v1222_v44 }
 0x565   :  { %v1037_v52 = vpop.permute.xlu0 %1036 }
 0x566   :  { %1483 = vmatmul.mubr.msk.f32.vlgmr.msra.gmra.mxu1 %vm190_vm3, %v521_v46  ;;  %1513 = vmatmul.mubr.msk.f32.vlgmr.msra.gmra.mxu0 %vm190_vm3, %v1037_v52  ;;  %v1220_v46 = vld [vmem:[#allocation7 + $0x8] sm:$0xff] }
 0x567   :  { %1487 = vmatprep.mubr.msk.f32.mxu1 %vm1693_vm2, %v1692_v10  ;;  %1521 = vmatpush3.msk.msra.mxu0 %vm88_vm0, %v1222_v44 }
 0x568   :  { %1522 = vmatprep.subr.mxu0 %v1221_v45 }
 0x569   :  { %1523 = vmatpush3.msra.mxu0 %v1221_v45 }
 0x56a   :  { %1524 = vmatprep.subr.mxu0 %v1220_v46 }
 0x56b   :  { %1525 = vmatpush3.msra.mxu0 %v1220_v46 }
 0x56c   :  { %1526 = vmatprep.subr.mxu0 %v1219_v47 }
 0x56d   :  { %1527 = vmatpush3.msra.mxu0 %v1219_v47 }
 0x57c   :  { %v779_v53 = vpop.f32.mrf.mxu0 }
 0x57d   :  { %v783_v54 = vsel %vm266_vm4, %v779_v53, -inf }
 0x57e   :  { %784 = vmax.xlane.f32.xlu0 %v783_v54  ;;  %v1494_v55 = vpop.f32.mrf.mxu0 }
 0x607   :  { %v785_v56 = vpop.xlane.xlu0 %784 }
 0x608   :  { %v786_v57 = vsub.f32 %v779_v53, %v785_v56 }
 0x60a   :  { %v787_v58 = vmul.f32 1.442695, %v786_v57 }
 0x60c   :  { %1559 = vpow2.f32 %v787_v58 }
 0x619   :  { %v1560_v8 = vpop.eup %1559 }
 0x61a   :  { %v789_v9 = vsel %vm266_vm4, %v1560_v8, 0.0 }
 0x61e   :  { %v945_v59 = vpop.f32.mrf.mxu0 }
 0x61f   :  { %v949_v60 = vsel %vm266_vm4, %v945_v59, -inf }
 0x620   :  { %950 = vmax.xlane.f32.xlu0 %v949_v60  ;;  %v1504_v61 = vpop.f32.mrf.mxu0 }
 0x622   :  { %v516_v62 = vpop.f32.mrf.mxu1 }
 0x624   :  { %v1479_v63 = vpop.f32.mrf.mxu1 }
 0x626   :  { %v594_v0 = vpop.f32.mrf.mxu1  ;;  %v1110_v1 = vpop.f32.mrf.mxu0 }
 0x627   :  { %v598_v3 = vsel %vm266_vm4, %v594_v0, -inf  ;;  %v1114_v7 = vsel %vm266_vm4, %v1110_v1, -inf }
 0x628   :  { %v1514_v4 = vpop.f32.mrf.mxu0  ;;  %599 = vmax.xlane.f32.xlu1 %v598_v3  ;;  %v1484_v6 = vpop.f32.mrf.mxu1 }
 0x62c   :  { %1115 = vmax.xlane.f32.xlu1 %v1114_v7 }
 0x630   :  { %790 = vadd.xlane.f32.xlu1 %v789_v9 }
 0x6a9   :  { %v951_v11 = vpop.xlane.xlu0 %950 }
 0x6aa   :  { %v952_v12 = vsub.f32 %v945_v59, %v951_v11 }
 0x6ac   :  { %v953_v13 = vmul.f32 1.442695, %v952_v12 }
 0x6ae   :  { %1561 = vpow2.f32 %v953_v13 }
 0x6b1   :  { %v600_v14 = vpop.xlane.xlu1 %599 }
 0x6b2   :  { %v601_v17 = vsub.f32 %v594_v0, %v600_v14 }
 0x6b4   :  { %v602_v18 = vmul.f32 1.442695, %v601_v17 }
 0x6b5   :  { %v1116_v19 = vpop.xlane.xlu1 %1115 }
 0x6b6   :  { %1563 = vpow2.f32 %v602_v18  ;;  %v1117_v20 = vsub.f32 %v1110_v1, %v1116_v19 }
 0x6b8   :  { %v1118_v21 = vmul.f32 1.442695, %v1117_v20 }
 0x6b9   :  { %v791_v29 = vpop.xlane.xlu1 %790 }
 0x6ba   :  { %1565 = vpow2.f32 %v1118_v21 }
 0x6bb   :  { %v1562_v22 = vpop.eup %1561 }
 0x6bc   :  { %v955_v23 = vsel %vm266_vm4, %v1562_v22, 0.0 }
 0x6bd   :  { %956 = vadd.xlane.f32.xlu0 %v955_v23 }
 0x6c3   :  { %v1564_v24 = vpop.eup %1563 }
 0x6c4   :  { %v604_v25 = vsel %vm266_vm4, %v1564_v24, 0.0 }
 0x6c5   :  { %605 = vadd.xlane.f32.xlu0 %v604_v25 }
 0x6c7   :  { %v1566_v26 = vpop.eup %1565 }
 0x6c8   :  { %v1120_v27 = vsel %vm266_vm4, %v1566_v26, 0.0 }
 0x6c9   :  { %1121 = vadd.xlane.f32.xlu1 %v1120_v27 }
 0x6da   :  { %795 = vrot.lane.b32.xlu1 %v1777_v15, %s1695_s2 }
 0x6db   :  { %609 = vrot.lane.b32.xlu0 %v1779_v16, %s1701_s10 }
 0x6de   :  { %960 = vrot.lane.b32.xlu1 %v1777_v15, %s1697_s6 }
 0x6df   :  { %1125 = vrot.lane.b32.xlu0 %v1777_v15, %s1701_s10 }
 0x6e2   :  { %695 = vrot.lane.b32.xlu1 %v516_v62, %s1702_s11 }
 0x746   :  { %v957_v28 = vpop.xlane.xlu0 %956 }
 0x74e   :  { %v606_v31 = vpop.xlane.xlu0 %605 }
 0x74f   :  { %1567 = vrcp.f32 %v606_v31 }
 0x750   :  { %1569 = vrcp.f32 %v791_v29 }
 0x751   :  { %1571 = vrcp.f32 %v957_v28 }
 0x752   :  { %v610_v32 = vpop.permute.xlu0 %609  ;;  %v1122_v34 = vpop.xlane.xlu1 %1121 }
 0x753   :  { %1486 = vmatpush3.msra.mxu1 %v610_v32  ;;  %1573 = vrcp.f32 %v1122_v34 }
 0x754   :  { %1495 = vmatprep.subr.mxu1 %v1692_v10 }
 0x756   :  { %v796_v35 = vpop.permute.xlu1 %795  ;;  %v1126_v42 = vpop.permute.xlu0 %1125 }
 0x75a   :  { %v961_v39 = vpop.permute.xlu1 %960 }
 0x75c   :  { %v1568_v16 = vpop.eup %1567 }
 0x75d   :  { %v1864_v36 = vmul.f32 %v1568_v16, %v1564_v24  ;;  %v1570_v15 = vpop.eup %1569 }
 0x75e   :  { %v1871_v37 = vmul.f32 %v1570_v15, %v1560_v8  ;;  %v1572_v38 = vpop.eup %1571  ;;  %v696_v56 = vpop.permute.xlu1 %695 }
 0x75f   :  { %1488 = vmatmul.mubr.msk.f32.vlgmr.msra.gmra.mxu1 %vm266_vm4, %v1864_v36  ;;  %v1878_v40 = vmul.f32 %v1572_v38, %v1562_v22  ;;  %v702_v57 = vsel %vm190_vm3, %v1810_v33, %v696_v56 }
 0x760   :  { %1496 = vmatpush3.msra.mxu1 %v796_v35  ;;  %1497 = vmatprep.mubr.msk.f32.mxu1 %vm1693_vm2, %v1692_v10  ;;  %v1574_v41 = vpop.eup %1573 }
 0x761   :  { %1505 = vmatprep.subr.mxu1 %v1692_v10  ;;  %v1884_v43 = vmul.f32 %v1574_v41, %v1566_v26 }
 0x763   :  { %1498 = vmatmul.mubr.msk.f32.vlgmr.msra.gmra.mxu1 %vm266_vm4, %v1871_v37 }
 0x764   :  { %1506 = vmatpush3.msra.mxu1 %v961_v39  ;;  %1507 = vmatprep.mubr.msk.f32.mxu1 %vm1693_vm2, %v1692_v10 }
 0x765   :  { %1515 = vmatprep.subr.mxu1 %v1692_v10 }
 0x767   :  { %1508 = vmatmul.mubr.msk.f32.vlgmr.msra.gmra.mxu1 %vm266_vm4, %v1878_v40 }
 0x768   :  { %1516 = vmatpush3.msra.mxu1 %v1126_v42  ;;  %1517 = vmatprep.mubr.msk.f32.mxu1 %vm1693_vm2, %v1692_v10 }
 0x76b   :  { %1518 = vmatmul.mubr.msk.f32.vlgmr.msra.gmra.mxu1 %vm266_vm4, %v1884_v43 }
 0x81f   :  { %v681_v48 = vpop.f32.mrf.mxu1 }
 0x820   :  { %699 = vrot.lane.b32.xlu0 %v681_v48, %s1703_s12 }
 0x821   :  { %v1489_v10 = vpop.f32.mrf.mxu1 }
 0x823   :  { %v867_v49 = vpop.f32.mrf.mxu1 }
 0x825   :  { %v1499_v51 = vpop.f32.mrf.mxu1 }
 0x827   :  { %v1032_v52 = vpop.f32.mrf.mxu1 }
 0x828   :  { %1210 = vrot.lane.b32.xlu1 %v1032_v52, %s1702_s11 }
 0x829   :  { %v1509_v53 = vpop.f32.mrf.mxu1 }
 0x82b   :  { %v1197_v54 = vpop.f32.mrf.mxu1 }
 0x82c   :  { %1214 = vrot.lane.b32.xlu0 %v1197_v54, %s1703_s12 }
 0x82d   :  { %v1519_v55 = vpop.f32.mrf.mxu1 }
 0x892   :  { %v700_v58 = vpop.permute.xlu0 %699 }
 0x893   :  { %v704_v59 = vsel %vm703_vm5, %v702_v57, %v700_v58 }
 0x894   :  { %1528 = vmatprep.mubr.msk.f32.mxu0 %vm69_vm1, %v704_v59 }
 0x89a   :  { %v1211_v60 = vpop.permute.xlu1 %1210 }
 0x89b   :  { %v1217_v61 = vsel %vm190_vm3, %v867_v49, %v1211_v60 }
 0x89e   :  { %v1215_v62 = vpop.permute.xlu0 %1214 }
 0x89f   :  { %v1218_v63 = vsel %vm703_vm5, %v1217_v61, %v1215_v62 }
 0x8a0   :  { %1529 = vmatmul.mubr.msk.f32.vlgmr.msra.gmra.mxu0 %vm69_vm1, %v1218_v63 }
 0x960   :  { %v1530_v0 = vpop.f32.mrf.mxu0 }
 0x961   :  { %v1308_v1 = vadd.f32 %v1530_v0, %v1756_v5 }
 0x962   :  { %v1298_v3 = vpop.f32.mrf.mxu0 }
 0x963   :  { %v1307_v4 = vadd.f32 %v1298_v3, %v1751_v2  ;;  %v1312_v6 = vsel %vm69_vm1, %v1308_v1, 0.0 }
 0x964   :  { %1313 = vadd.xlane.f32.xlu0 %v1312_v6 }
 0x965   :  { %v1309_v33 = vsel %vm69_vm1, %v1307_v4, 0.0 }
 0x966   :  { %1310 = vadd.xlane.f32.xlu1 %v1309_v33 }
 0x977   :  { %688 = vrot.lane.b32.xlu1 %v1864_v36, %s1704_s13 }
 0x97a   :  { %685 = vrot.lane.b32.xlu0 %v1835_v50, %s1690_s21 }
 0x9ed   :  { %v1314_v7 = vpop.xlane.xlu0 %1313 }
 0x9ee   :  { %v1317_v8 = vmul.f32 0.037037037, %v1314_v7 }
 0x9ef   :  { %v1311_v9 = vpop.xlane.xlu1 %1310 }
 0x9f0   :  { %v1319_v11 = vsub.f32 %v1308_v1, %v1317_v8  ;;  %v1316_v5 = vmul.f32 0.037037037, %v1311_v9 }
 0x9f1   :  { %v686_v12 = vpop.permute.xlu0 %685 }
 0x9f2   :  { %v1318_v2 = vsub.f32 %v1307_v4, %v1316_v5  ;;  %v691_v13 = vsel %vm266_vm4, %v1798_v30, %v686_v12  ;;  %v1321_v14 = vmul.f32 %v1319_v11, %v1319_v11 }
 0x9f3   :  { %v689_v17 = vpop.permute.xlu1 %688 }
 0x9f4   :  { %v693_v18 = vsel %vm692_vm6, %v691_v13, %v689_v17  ;;  %v1325_v19 = vsel %vm69_vm1, %v1321_v14, 0.0  ;;  %v1320_v20 = vmul.f32 %v1318_v2, %v1318_v2 }
 0x9f5   :  { %1326 = vadd.xlane.f32.xlu1 %v1325_v19  ;;  %1339 = vst.msk [vmem:[#allocation9] sm:$0xff] %vm1338_vm7, %v693_v18 }
 0x9f6   :  { %v1322_v50 = vsel %vm69_vm1, %v1320_v20, 0.0 }
 0x9f7   :  { %1323 = vadd.xlane.f32.xlu0 %v1322_v50 }
 0xa06   :  { %1201 = vrot.lane.b32.xlu1 %v1878_v40, %s1690_s21 }
 0xa0d   :  { %1204 = vrot.lane.b32.xlu0 %v1884_v43, %s1704_s13 }
 0xa7e   :  { %v1327_v30 = vpop.xlane.xlu1 %1326 }
 0xa7f   :  { %v1329_v21 = vmul.f32 0.037037037, %v1327_v30 }
 0xa80   :  { %v1324_v22 = vpop.xlane.xlu0 %1323 }
 0xa81   :  { %v1331_v23 = vadd.f32 1e-05, %v1329_v21  ;;  %v1328_v24 = vmul.f32 0.037037037, %v1324_v22 }
 0xa82   :  { %v1202_v25 = vpop.permute.xlu1 %1201 }
 0xa83   :  { %1575 = vrsqrt.f32 %v1331_v23  ;;  %v1330_v26 = vadd.f32 1e-05, %v1328_v24  ;;  %v1207_v27 = vsel %vm266_vm4, %v1871_v37, %v1202_v25 }
 0xa84   :  { %v1205_v28 = vpop.permute.xlu0 %1204 }
 0xa85   :  { %1577 = vrsqrt.f32 %v1330_v26  ;;  %v1208_v29 = vsel %vm692_vm6, %v1207_v27, %v1205_v28 }
 0xa86   :  { %1340 = vst.msk [vmem:[#allocation9 + $0x8] sm:$0xff] %vm1338_vm7, %v1208_v29 }
 0xa87   :  { %1650 = shalt.err (!%p1647_p5)
}
 0xa88   :  { %1364 = dma.vmem_to_hbm [thread:$0]  %s1359_s15, 256, %s1934_s4, [#allocation10], %s1689_s20, %s1689_s20, %s1690_s21  }
 0xa89   :  { %s1706_s19 = smov [#allocation8]  }
 0xa8a   :  { %s1346_s22 = sshll.u32 %s1706_s19, 4  ;;  %s1347_s22 = int_to_ptr.vmem [resolvable:$true] %s1346_s22 }
 0xa8b   :  { %s1659_s23 = scalar_lea.vmem %s1347_s22, 256  ;;  %p1664_p7 = scmp.lt.s32.totalorder %s1347_s22, %s1347_s22 }
 0xa8c   :  { %p1660_p6 = scmp.ne.s32.totalorder %s1347_s22, %s1659_s23  ;;  %p1665_p8 = scmp.lt.s32.totalorder %s1659_s23, %s1659_s23 }
 0xa8e   :  { %p1666_p9 = por %p1665_p8, %p1664_p7 }
 0xa90   :  { %v1576_v31 = vpop.eup %1575  ;;  %p1667_p10 = pnand %p1666_p9, %p1660_p6 }
 0xa91   :  { %v1335_v32 = vmul.f32 %v1576_v31, %v1319_v11 }
 0xa92   :  { %v1578_v34 = vpop.eup %1577 }
 0xa93   :  { %v1334_v16 = vmul.f32 %v1578_v34, %v1318_v2  ;;  %1337 = vst.msk [vmem:[#allocation8 + $0x8] sm:$0xff] %vm69_vm1, %v1335_v32 }
 0xa95   :  { %1336 = vst.msk [vmem:[#allocation8] sm:$0xff] %vm69_vm1, %v1334_v16 }
 0xa96   :  { %1670 = shalt.err (!%p1667_p10)
}
 0xa97   :  { %1352 = dma.vmem_to_hbm [thread:$0]  %s1347_s22, 256, %s1933_s3, [#allocation4], %s1689_s20, %s1689_s20, %s1690_s21  }
 0xa98   :  { %1683 = dma.done.wait [#allocation4], 256  }
 0xa99   :  { %1684 = vsyncadd [#allocation4], 4294967040 }
 0xa9a   :  { %1685 = dma.done.wait [#allocation10], 256  }
 0xa9b   :  { %1686 = vsyncadd [#allocation10], 4294967040 }
 0xa9c   :  { %1371 = vsyncpa [#allocation3], 1 }
 0xa9d   :  { %1372 = vsyncpa [#allocation6], 1 }
 0xa9e   :  { %1373 = vsyncpa [#allocation4], 1 }
 0xa9f   :  { %1374 = vsyncpa [#allocation10], 1 }

</bundles_post_ra>
